<compile_context>
chip_gen: v7x
topology: tpu7x:2x2x1
jax: 0.10.0
libtpu: 0.0.40
codegen_flags: <defaults>
</compile_context>

<pallas_src>
import functools

import jax
import jax.numpy as jnp
from jax import lax
from jax.experimental import pallas as pl
from jax.experimental.pallas import tpu as pltpu

_MIB = 1024 * 1024
_INV_SQRT2 = 0.7071067811865476


def _gelu_exact(h):
    # exact (erf-based) GELU, matching torch.nn.GELU() default
    return 0.5 * h * (1.0 + lax.erf(h * _INV_SQRT2))


def ffn_kernel_out_acc(x_ref, w1_ref, b1_ref, w2_ref, b2_ref, o_ref):
    """Variant for f32 outputs: accumulate linear_2 partials directly in o_ref.

    x_ref:(tm,Hp)  w1_ref:(Hp,tI)  b1_ref:(1,tI)  w2_ref:(tI,Hp)  b2_ref:(1,Hp)
    o_ref:(tm,Hp) f32, block-index invariant over the k axis (stays in VMEM).
    """
    k = pl.program_id(1)

    @pl.when(k == 0)
    def _():
        o_ref[...] = jnp.zeros_like(o_ref)

    h = jnp.dot(x_ref[...], w1_ref[...],
                preferred_element_type=jnp.float32) + b1_ref[...]
    g = _gelu_exact(h)
    o_ref[...] += jnp.dot(g.astype(w2_ref.dtype), w2_ref[...],
                          preferred_element_type=jnp.float32)

    @pl.when(k == pl.num_programs(1) - 1)
    def _():
        # dropout: identity (eval mode)
        o_ref[...] += b2_ref[...]


def ffn_kernel_scratch_acc(x_ref, w1_ref, b1_ref, w2_ref, b2_ref, o_ref, acc_ref):
    """Variant for non-f32 outputs: f32 VMEM accumulator, cast at the end."""
    k = pl.program_id(1)

    @pl.when(k == 0)
    def _():
        acc_ref[...] = jnp.zeros_like(acc_ref)

    h = jnp.dot(x_ref[...], w1_ref[...],
                preferred_element_type=jnp.float32) + b1_ref[...]
    g = _gelu_exact(h)
    acc_ref[...] += jnp.dot(g.astype(w2_ref.dtype), w2_ref[...],
                            preferred_element_type=jnp.float32)

    @pl.when(k == pl.num_programs(1) - 1)
    def _():
        # dropout: identity (eval mode)
        o_ref[...] = (acc_ref[...] + b2_ref[...]).astype(o_ref.dtype)


def _round_up(a, b):
    return -(-a // b) * b


def _device_tuning():
    """Per-generation (tm, ti, vmem_limit_bytes, n_tensorcores)."""
    kind = ""
    try:
        kind = jax.devices()[0].device_kind.lower()
    except Exception:  # pragma: no cover - defensive
        pass
    if "v7" in kind:
        return 512, 256, 48 * _MIB, 2          # 64 MiB/TC VMEM, 2 TCs/chip
    if "v6" in kind:
        return 1024, 512, 96 * _MIB, 1         # 128 MiB VMEM, 1.4 TB/s HBM
    if "v5" in kind:
        return 512, 512, 96 * _MIB, 1          # v5e: 128 MiB VMEM, 0.82 TB/s HBM
    # unknown: conservative setting that fits every generation's physical VMEM
    return 512, 256, 48 * _MIB, 2


def _nbytes(a):
    return a.size * jnp.dtype(a.dtype).itemsize


@functools.partial(jax.jit, static_argnames=("tm", "ti", "compute_dtype"))
def feed_forward(x, w1, b1, w2, b2, *, tm=None, ti=None,
                 compute_dtype=jnp.bfloat16):
    """x: (B, S, H); w1: (H, I); b1: (I,); w2: (I, H); b2: (H,).

    Weights are passed pre-transposed vs. nn.Linear so the kernel computes
    plain `x @ W`.  Matmul operands run in `compute_dtype` (bf16 by default)
    with f32 accumulation; the output keeps x's dtype.
    """
    B, S, H = x.shape
    I = w1.shape[1]
    M = B * S
    out_dtype = x.dtype

    tm_def, ti_def, vmem_limit, n_cores = _device_tuning()
    tm = tm_def if tm is None else tm
    ti = ti_def if ti is None else ti

    # Lane-dense (multiple-of-128) feature dims; sublane-aligned row tile.
    Hp = _round_up(H, 128)
    Ip0 = _round_up(I, 128)
    ti_eff = _round_up(min(ti, Ip0), 128)
    Ip = _round_up(Ip0, ti_eff)

    M8 = _round_up(M, 8)
    tm_eff = _round_up(min(tm, M8), 8)
    if n_cores >= 2 and M8 >= 16:
        # Keep grid[0] >= 2 so the parallel row axis shards across both TCs.
        half = _round_up(-(-M // 2), 8)
        tm_eff = min(tm_eff, max(8, half))
    Mp = _round_up(M8, tm_eff)

    # Cast matmul operands to compute dtype; biases stay f32 (added on the
    # f32 accumulation path, negligible bandwidth).  Zero-padding is
    # numerically inert (padded rows/cols contribute exactly zero) and is
    # skipped entirely when the shapes are already aligned.
    x2d = x.reshape(M, H).astype(compute_dtype)
    if (Mp, Hp) != (M, H):
        x2d = jnp.pad(x2d, ((0, Mp - M), (0, Hp - H)))
    w1p = w1.astype(compute_dtype)
    if (Hp, Ip) != (H, I):
        w1p = jnp.pad(w1p, ((0, Hp - H), (0, Ip - I)))
    w2p = w2.astype(compute_dtype)
    if (Ip, Hp) != (I, H):
        w2p = jnp.pad(w2p, ((0, Ip - I), (0, Hp - H)))
    b1p = b1.astype(jnp.float32)
    if Ip != I:
        b1p = jnp.pad(b1p, (0, Ip - I))
    b1p = b1p.reshape(1, Ip)
    b2p = b2.astype(jnp.float32)
    if Hp != H:
        b2p = jnp.pad(b2p, (0, Hp - H))
    b2p = b2p.reshape(1, Hp)

    grid = (Mp // tm_eff, Ip // ti_eff)
    grid_m = grid[0]

    # f32 outputs accumulate directly into o_ref (saves tm*Hp*4 B of VMEM and
    # an epilogue copy); other dtypes use an f32 scratch accumulator.
    if jnp.dtype(out_dtype) == jnp.float32:
        kernel = ffn_kernel_out_acc
        scratch_shapes = []
    else:
        kernel = ffn_kernel_scratch_acc
        scratch_shapes = [pltpu.VMEM((tm_eff, Hp), jnp.float32)]

    cost = pl.CostEstimate(
        flops=4 * Mp * Hp * Ip,                      # two matmuls
        transcendentals=Mp * Ip,                     # erf
        bytes_accessed=(_nbytes(x2d)
                        + grid_m * (_nbytes(w1p) + _nbytes(b1p) + _nbytes(w2p))
                        + _nbytes(b2p)
                        + Mp * Hp * jnp.dtype(out_dtype).itemsize),
    )

    out = pl.pallas_call(
        kernel,
        out_shape=jax.ShapeDtypeStruct((Mp, Hp), out_dtype),
        grid_spec=pltpu.PrefetchScalarGridSpec(
            num_scalar_prefetch=0,
            grid=grid,
            in_specs=[
                pl.BlockSpec((tm_eff, Hp), lambda i, k: (i, 0)),  # x rows
                pl.BlockSpec((Hp, ti_eff), lambda i, k: (0, k)),  # W1 I-tile
                pl.BlockSpec((1, ti_eff), lambda i, k: (0, k)),   # b1 I-tile
                pl.BlockSpec((ti_eff, Hp), lambda i, k: (k, 0)),  # W2 I-tile
                pl.BlockSpec((1, Hp), lambda i, k: (0, 0)),       # b2
            ],
            out_specs=pl.BlockSpec((tm_eff, Hp), lambda i, k: (i, 0)),
            scratch_shapes=scratch_shapes,
        ),
        compiler_params=pltpu.CompilerParams(
            dimension_semantics=("parallel", "arbitrary"),
            vmem_limit_bytes=vmem_limit,
        ),
        cost_estimate=cost,
    )(x2d, w1p, b1p, w2p, b2p)

    if (Mp, Hp) != (M, H):
        out = out[:M, :H]
    return out.reshape(B, S, H)


if __name__ == "__main__":
    # config: hidden_size=32, intermediate_size=128, hidden_dropout_prob=0.0 (eval)
    batch, seq, hidden, intermediate = 2, 8, 32, 128

    key = jax.random.PRNGKey(0)
    kx, k1, kb1, k2, kb2 = jax.random.split(key, 5)

    x = jax.random.normal(kx, (batch, seq, hidden), dtype=jnp.float32)

    # nn.Linear weights (W1:(I,H), W2:(H,I)) passed pre-transposed.
    w1 = (jax.random.normal(k1, (hidden, intermediate), dtype=jnp.float32)
          * (1.0 / jnp.sqrt(hidden)))
    b1 = jax.random.normal(kb1, (intermediate,), dtype=jnp.float32) * 0.01
    w2 = (jax.random.normal(k2, (intermediate, hidden), dtype=jnp.float32)
          * (1.0 / jnp.sqrt(intermediate)))
    b2 = jax.random.normal(kb2, (hidden,), dtype=jnp.float32) * 0.01

    y = feed_forward(x, w1, b1, w2, b2)
    y = jax.block_until_ready(y)

    # Reference 1: same mixed precision as the kernel (bf16 operands, f32 acc).
    xb = x.reshape(-1, hidden).astype(jnp.bfloat16).astype(jnp.float32)
    w1b = w1.astype(jnp.bfloat16).astype(jnp.float32)
    w2b = w2.astype(jnp.bfloat16).astype(jnp.float32)
    h_ref = xb @ w1b + b1
    g_ref = 0.5 * h_ref * (1.0 + lax.erf(h_ref * 0.7071067811865476))
    g_ref = g_ref.astype(jnp.bfloat16).astype(jnp.float32)
    y_mixed = (g_ref @ w2b + b2).reshape(batch, seq, hidden)
    assert jnp.allclose(y, y_mixed, atol=2e-3, rtol=2e-3), "mismatch vs mixed-precision reference"

    # Reference 2: pure-f32 torch-equivalent math (loose tolerance for bf16 operands).
    h32 = x.reshape(-1, hidden) @ w1 + b1
    g32 = 0.5 * h32 * (1.0 + lax.erf(h32 * 0.7071067811865476))
    y_f32 = (g32 @ w2 + b2).reshape(batch, seq, hidden)
    assert jnp.allclose(y, y_f32, atol=7e-2, rtol=7e-2), "mismatch vs f32 reference"

    print("KERNEL_OK")
</pallas_src>

<mosaic_0001>
module attributes {stable_mosaic.version = 11 : i64} {
  func.func @ffn_kernel_out_acc(%arg0: i32, %arg1: i32, %arg2: memref<8x128xbf16, #tpu.memory_space<vmem>>, %arg3: memref<128x128xbf16, #tpu.memory_space<vmem>>, %arg4: memref<1x128xf32, #tpu.memory_space<vmem>>, %arg5: memref<128x128xbf16, #tpu.memory_space<vmem>>, %arg6: memref<1x128xf32, #tpu.memory_space<vmem>>, %arg7: memref<8x128xf32, #tpu.memory_space<vmem>>) attributes {dimension_semantics = [#tpu.dimension_semantics<parallel>, #tpu.dimension_semantics<arbitrary>], iteration_bounds = array<i64: 2, 1>, scalar_prefetch = 0 : i64, scratch_operands = 0 : i64, tpu.core_type = #tpu.core_type<tc>, window_params = [{transform_indices = @transform_0, window_bounds = array<i64: 8, 128>}, {transform_indices = @transform_1, window_bounds = array<i64: 128, 128>}, {transform_indices = @transform_2, window_bounds = array<i64: 1, 128>}, {transform_indices = @transform_3, window_bounds = array<i64: 128, 128>}, {pipeline_mode = #tpu.pipeline_mode<synchronous>, transform_indices = @transform_4, window_bounds = array<i64: 1, 128>}, {transform_indices = @transform_5, window_bounds = array<i64: 8, 128>}]} {
    %c0_i32 = arith.constant 0 : i32
    %0 = arith.cmpi eq, %arg1, %c0_i32 : i32
    %1 = arith.extui %0 : i1 to i32
    %c0_i32_0 = arith.constant 0 : i32
    %2 = arith.cmpi ne, %1, %c0_i32_0 : i32
    scf.if %2 {
      %cst_18 = arith.constant 0.000000e+00 : f32
      %26 = vector.broadcast %cst_18 : f32 to vector<8x128xf32>
      %c0_19 = arith.constant 0 : index
      %c0_20 = arith.constant 0 : index
      %27 = vector.load %arg7[%c0_19, %c0_20] : memref<8x128xf32, #tpu.memory_space<vmem>>, vector<8x128xf32>
      tpu.vector_store %arg7[%c0_19, %c0_20], %26 {strides = array<i32>} : memref<8x128xf32, #tpu.memory_space<vmem>>, vector<8x128xf32>,
    } else {
    }
    %c0 = arith.constant 0 : index
    %c0_1 = arith.constant 0 : index
    %3 = vector.load %arg2[%c0, %c0_1] : memref<8x128xbf16, #tpu.memory_space<vmem>>, vector<8x128xbf16>
    %c0_2 = arith.constant 0 : index
    %c0_3 = arith.constant 0 : index
    %4 = vector.load %arg3[%c0_2, %c0_3] : memref<128x128xbf16, #tpu.memory_space<vmem>>, vector<128x128xbf16>
    %cst = arith.constant dense<0.000000e+00> : vector<8x128xf32>
    %5 = tpu.matmul %3, %4, %cst {dimension_numbers = #tpu.dot_dimension_numbers<[1], [0], [0], [1], [0, 0, 1, 1], [], []>} : vector<8x128xbf16>, vector<128x128xbf16>, vector<8x128xf32> -> vector<8x128xf32>
    %c0_4 = arith.constant 0 : index
    %c0_5 = arith.constant 0 : index
    %6 = vector.load %arg4[%c0_4, %c0_5] : memref<1x128xf32, #tpu.memory_space<vmem>>, vector<1x128xf32>
    %7 = vector.broadcast %6 : vector<1x128xf32> to vector<8x128xf32>
    %8 = arith.addf %5, %7 : vector<8x128xf32>
    %cst_6 = arith.constant 5.000000e-01 : f32
    %9 = vector.broadcast %cst_6 : f32 to vector<8x128xf32>
    %10 = arith.mulf %9, %8 : vector<8x128xf32>
    %cst_7 = arith.constant 0.707106769 : f32
    %11 = vector.broadcast %cst_7 : f32 to vector<8x128xf32>
    %12 = arith.mulf %8, %11 : vector<8x128xf32>
    %13 = math.erf %12 : vector<8x128xf32>
    %cst_8 = arith.constant 1.000000e+00 : f32
    %14 = vector.broadcast %cst_8 : f32 to vector<8x128xf32>
    %15 = arith.addf %14, %13 : vector<8x128xf32>
    %16 = arith.mulf %10, %15 : vector<8x128xf32>
    %c0_9 = arith.constant 0 : index
    %c0_10 = arith.constant 0 : index
    %17 = vector.load %arg7[%c0_9, %c0_10] : memref<8x128xf32, #tpu.memory_space<vmem>>, vector<8x128xf32>
    %18 = arith.truncf %16 : vector<8x128xf32> to vector<8x128xbf16>
    %c0_11 = arith.constant 0 : index
    %c0_12 = arith.constant 0 : index
    %19 = vector.load %arg5[%c0_11, %c0_12] : memref<128x128xbf16, #tpu.memory_space<vmem>>, vector<128x128xbf16>
    %cst_13 = arith.constant dense<0.000000e+00> : vector<8x128xf32>
    %20 = tpu.matmul %18, %19, %cst_13 {dimension_numbers = #tpu.dot_dimension_numbers<[1], [0], [0], [1], [0, 0, 1, 1], [], []>} : vector<8x128xbf16>, vector<128x128xbf16>, vector<8x128xf32> -> vector<8x128xf32>
    %21 = arith.addf %17, %20 : vector<8x128xf32>
    %c0_14 = arith.constant 0 : index
    %c0_15 = arith.constant 0 : index
    %22 = vector.load %arg7[%c0_14, %c0_15] : memref<8x128xf32, #tpu.memory_space<vmem>>, vector<8x128xf32>
    tpu.vector_store %arg7[%c0_14, %c0_15], %21 {strides = array<i32>} : memref<8x128xf32, #tpu.memory_space<vmem>>, vector<8x128xf32>,
    %c0_i32_16 = arith.constant 0 : i32
    %23 = arith.cmpi eq, %arg1, %c0_i32_16 : i32
    %24 = arith.extui %23 : i1 to i32
    %c0_i32_17 = arith.constant 0 : i32
    %25 = arith.cmpi ne, %24, %c0_i32_17 : i32
    scf.if %25 {
      %c0_18 = arith.constant 0 : index
      %c0_19 = arith.constant 0 : index
      %26 = vector.load %arg7[%c0_18, %c0_19] : memref<8x128xf32, #tpu.memory_space<vmem>>, vector<8x128xf32>
      %c0_20 = arith.constant 0 : index
      %c0_21 = arith.constant 0 : index
      %27 = vector.load %arg6[%c0_20, %c0_21] : memref<1x128xf32, #tpu.memory_space<vmem>>, vector<1x128xf32>
      %28 = vector.broadcast %27 : vector<1x128xf32> to vector<8x128xf32>
      %29 = arith.addf %26, %28 : vector<8x128xf32>
      %c0_22 = arith.constant 0 : index
      %c0_23 = arith.constant 0 : index
      %30 = vector.load %arg7[%c0_22, %c0_23] : memref<8x128xf32, #tpu.memory_space<vmem>>, vector<8x128xf32>
      tpu.vector_store %arg7[%c0_22, %c0_23], %29 {strides = array<i32>} : memref<8x128xf32, #tpu.memory_space<vmem>>, vector<8x128xf32>,
    } else {
    }
    return
  }
  func.func @transform_0(%arg0: i32, %arg1: i32) -> (i32, i32) {
    %c0_i32 = arith.constant 0 : i32
    %c0_i32_0 = arith.constant 0 : i32
    return %arg0, %c0_i32 : i32, i32
  }
  func.func @transform_1(%arg0: i32, %arg1: i32) -> (i32, i32) {
    %c0_i32 = arith.constant 0 : i32
    %c0_i32_0 = arith.constant 0 : i32
    return %c0_i32, %arg1 : i32, i32
  }
  func.func @transform_2(%arg0: i32, %arg1: i32) -> (i32, i32) {
    %c0_i32 = arith.constant 0 : i32
    %c0_i32_0 = arith.constant 0 : i32
    return %c0_i32, %arg1 : i32, i32
  }
  func.func @transform_3(%arg0: i32, %arg1: i32) -> (i32, i32) {
    %c0_i32 = arith.constant 0 : i32
    %c0_i32_0 = arith.constant 0 : i32
    return %arg1, %c0_i32 : i32, i32
  }
  func.func @transform_4(%arg0: i32, %arg1: i32) -> (i32, i32) {
    %c0_i32 = arith.constant 0 : i32
    %c0_i32_0 = arith.constant 0 : i32
    %c0_i32_1 = arith.constant 0 : i32
    return %c0_i32, %c0_i32_0 : i32, i32
  }
  func.func @transform_5(%arg0: i32, %arg1: i32) -> (i32, i32) {
    %c0_i32 = arith.constant 0 : i32
    %c0_i32_0 = arith.constant 0 : i32
    return %arg0, %c0_i32 : i32, i32
  }
}

</mosaic_0001>

<bundles_post_ra>
// kernel: feed_forward.1
= control target key start
LH: loop header
LB: loop body
LE: loop exit
PB: predicated region body
PF: predicated region fallthrough
CT: control target
= control target key end

     0   :  { %s821_s18 = smov 0   ;;  %s823_s19 = smov 0   ;;  %s916_s0 = inlined_call_operand.vmem [shape: bf16[16,128], index: 0, kind: input, shape index: {}]   ;;  %s917_s1 = inlined_call_operand.vmem [shape: bf16[128,128], index: 1, kind: input, shape index: {}]   ;;  %s918_s2 = inlined_call_operand.vmem [shape: f32[1,128], index: 2, kind: input, shape index: {}]   ;;  %s919_s3 = inlined_call_operand.vmem [shape: bf16[128,128], index: 3, kind: input, shape index: {}]   ;;  %s920_s4 = inlined_call_operand.vmem [shape: f32[1,128], index: 4, kind: input, shape index: {}]   ;;  %s921_s5 = inlined_call_operand.vmem [shape: f32[16,128], index: 5, kind: output, shape index: {}]  }
   0x1   :  { %s825_s20 = smov 0  }
   0x2 LB: > { %s27_s21 = sadd.s32 1, %s783_s19  ;;  %p640_p0 = scmp.ge.s32.totalorder %s787_s20, 1  ;;  %s787_s20 = sphi %s825_s20, %s15_s20   ;;  %s783_s19 = sphi %s823_s19, %s923_s19   ;;  %s779_s18 = sphi %s821_s18, %s922_s18  }
   0x3   : > { %p29_p1 = scmp.ge.s32.totalorder %s27_s21, 2  ;;  %p226_p2 = scmp.lt.s32.totalorder %s787_s20, 3 }
   0x5   : > { %s925_s21 = smov (%p29_p1, %s27_s21), 0  ;;  %p227_p3 = pnand %p640_p0, %p226_p2 }
   0x6   : > { %v747_v0 = vld [vmem:[%s917_s1] sm:$0xff] (!%p227_p3)   ;;  %v789_v1 = vmov (!%p227_p3), 0.0   ;;  %v748_v2 = vld [vmem:[%s917_s1 + $0x8] sm:$0xff] (!%p227_p3)   ;;  %vm790_vm0 = vmmov (!%p227_p3), 0   ;;  %v749_v3 = vld [vmem:[%s917_s1 + $0x10] sm:$0xff] (!%p227_p3)   ;;  %p264_p4 = scmp.lt.s32.totalorder (!%p227_p3), %s779_s18, 1 }
   0x7   : > { %230 = sbr.rel (%p227_p3) target bundleno = 487 (0x1e7), region = 40  ;;  %681 = vmatprep.subr.bf16.mxu0 (!%p227_p3), %v789_v1  ;;  %701 = vmatprep.subr.bf16.mxu1 (!%p227_p3), %v789_v1  ;;  %v755_v4 = vld [vmem:[%s919_s3] sm:$0xff] (!%p227_p3)   ;;  %v750_v5 = vld [vmem:[%s917_s1 + $0x18] sm:$0xff] (!%p227_p3)   ;;  %v756_v6 = vld [vmem:[%s919_s3 + $0x8] sm:$0xff] (!%p227_p3)  }
   0x8   : > { %682 = vmatpush3.bf16.msra.mxu0 (!%p227_p3), %v747_v0  ;;  %697 = vmatprep.mubr.msk.bf16.mxu0 (!%p227_p3), %vm790_vm0, %v789_v1  ;;  %v751_v7 = vld [vmem:[%s917_s1 + $0x20] sm:$0xff] (!%p227_p3)   ;;  %v757_v8 = vld [vmem:[%s919_s3 + $0x10] sm:$0xff] (!%p227_p3)   ;;  %v752_v9 = vld [vmem:[%s917_s1 + $0x28] sm:$0xff] (!%p227_p3)  }
   0x9   : > { %683 = vmatprep.subr.bf16.mxu0 (!%p227_p3), %v789_v1  ;;  %717 = vmatprep.mubr.msk.bf16.mxu1 (!%p227_p3), %vm790_vm0, %v789_v1  ;;  %v753_v10 = vld [vmem:[%s917_s1 + $0x30] sm:$0xff] (!%p227_p3)   ;;  %v754_v11 = vld [vmem:[%s917_s1 + $0x38] sm:$0xff] (!%p227_p3)   ;;  %v759_v14 = vld [vmem:[%s919_s3 + $0x20] sm:$0xff] (!%p227_p3)  }
   0xa   : > { %702 = vmatpush3.bf16.msra.mxu1 (!%p227_p3), %v755_v4  ;;  %v758_v13 = vld [vmem:[%s919_s3 + $0x18] sm:$0xff] (!%p227_p3)   ;;  %v760_v15 = vld [vmem:[%s919_s3 + $0x28] sm:$0xff] (!%p227_p3)   ;;  %v761_v16 = vld [vmem:[%s919_s3 + $0x30] sm:$0xff] (!%p227_p3)  }
   0xb   : > { %703 = vmatprep.subr.bf16.mxu1 (!%p227_p3), %v789_v1  ;;  %v762_v17 = vld [vmem:[%s919_s3 + $0x38] sm:$0xff] (!%p227_p3)   ;;  %v643_v18 = vld [vmem:[%s918_s2] ss:$0 sm:$0xff] (!%p227_p3) }
   0xc   : > { %684 = vmatpush3.bf16.msra.mxu0 (!%p227_p3), %v748_v2  ;;  %v660_v31 = vld [vmem:[%s920_s4] ss:$0 sm:$0xff] (!%p227_p3) }
   0xd   : > { %685 = vmatprep.subr.bf16.mxu0 (!%p227_p3), %v789_v1 }
   0xe   : > { %704 = vmatpush3.bf16.msra.mxu1 %v756_v6  ;;  %s927_s18 = smov (!%p264_p4, %s779_s18), 1 }
   0xf   : > { %705 = vmatprep.subr.bf16.mxu1 %v789_v1  ;;  %s641_s17 = sshll.u32 %s927_s18, 2  ;;  %s642_s14 = sshll.u32 %s927_s18, 3 }
  0x10   : > { %686 = vmatpush3.bf16.msra.mxu0 %v749_v3  ;;  %s267_s26 = scalar_lea.vmem %s916_s0, %s641_s17  ;;  %s284_s23 = scalar_lea.vmem %s921_s5, %s642_s14 }
  0x11   : > { %687 = vmatprep.subr.bf16.mxu0 %v789_v1  ;;  %v291_v12 = vld [vmem:[%s267_s26] sm:$0xf] }
  0x12   : > { %706 = vmatpush3.bf16.msra.mxu1 %v757_v8 }
  0x13   : > { %707 = vmatprep.subr.bf16.mxu1 %v789_v1 }
  0x14   : > { %688 = vmatpush3.bf16.msra.mxu0 %v750_v5 }
  0x15   : > { %689 = vmatprep.subr.bf16.mxu0 %v789_v1 }
  0x16   : > { %708 = vmatpush3.bf16.msra.mxu1 %v758_v13 }
  0x17   : > { %709 = vmatprep.subr.bf16.mxu1 %v789_v1 }
  0x18   : > { %690 = vmatpush3.bf16.msra.mxu0 %v751_v7 }
  0x19   : > { %691 = vmatprep.subr.bf16.mxu0 %v789_v1 }
  0x1a   : > { %710 = vmatpush3.bf16.msra.mxu1 %v759_v14 }
  0x1b   : > { %711 = vmatprep.subr.bf16.mxu1 %v789_v1 }
  0x1c   : > { %692 = vmatpush3.bf16.msra.mxu0 %v752_v9 }
  0x1d   : > { %693 = vmatprep.subr.bf16.mxu0 %v789_v1 }
  0x1e   : > { %712 = vmatpush3.bf16.msra.mxu1 %v760_v15 }
  0x1f   : > { %713 = vmatprep.subr.bf16.mxu1 %v789_v1 }
  0x20   : > { %694 = vmatpush3.bf16.msra.mxu0 %v753_v10 }
  0x21   : > { %695 = vmatprep.subr.bf16.mxu0 %v789_v1 }
  0x22   : > { %714 = vmatpush3.bf16.msra.mxu1 %v761_v16 }
  0x23   : > { %715 = vmatprep.subr.bf16.mxu1 %v789_v1 }
  0x24   : > { %696 = vmatpush3.bf16.msra.mxu0 %v754_v11 }
  0x26   : > { %716 = vmatpush3.bf16.msra.mxu1 %v762_v17 }
  0x27   : > { %698 = vmatmul.mubr.bf16.vlgmr.msra.gmra.mrb[0].mxu0 %v291_v12 }
  0xfa   : > { %v397_v19 = vpop.f32.mrb[0].mxu0 }
  0xfb   : > { %v398_v20 = vadd.f32 %v643_v18, %v397_v19  ;;  %v699_v21 = vpop.f32.mrb[1].mxu0 }
  0xfc   : > { %v400_v22 = vpop.f32.mrb[2].mxu0 }
  0xfd   : > { %v404_v23 = vmul.f32 0.70710677, %v398_v20  ;;  %v700_v24 = vpop.f32.mrb[3].mxu0  ;;  %v403_v26 = vmul.f32 0.5, %v398_v20 }
  0xff   : > { %763 = verf.f32 %v404_v23 }
 0x109   : > { %v764_v25 = vpop.eup %763 }
 0x10a   : > { %v406_v27 = vadd.f32 1.0, %v764_v25 }
 0x10c   : > { %v407_v28 = vmul.f32 %v406_v27, %v403_v26 }
 0x10e   : > { %v409_v29 = vpack.c.bf16 %v407_v28, %v407_v28 }
 0x110   : > { %718 = vmatmul.mubr.bf16.vlgmr.msra.gmra.mrb[0].mxu1 %v409_v29 }
 0x1e3   : > { %v508_v30 = vpop.f32.mrb[0].mxu1 }
 0x1e4   : > { %v719_v32 = vpop.f32.mrb[1].mxu1  ;;  %v527_v34 = vadd.f32 %v660_v31, %v508_v30 }
 0x1e5   : > { %v511_v33 = vpop.f32.mrb[2].mxu1 }
 0x1e6   : > { %v720_v35 = vpop.f32.mrb[3].mxu1  ;;  %528 = vst [vmem:[%s284_s23] sm:$0xff] %v527_v34 }
 0x1e7 PF: > { %s15_s20 = sadd.s32 1, %s787_s20   ;;  %s922_s18 = smov %s783_s19 }
 0x1e8   : > { %p12_p5 = scmp.ge.s32.totalorder %s15_s20, 4   ;;  %s923_s19 = smov %s925_s21 }
 0x1ea   :  { %14 = sbr.rel (!%p12_p5) target bundleno = 2 (0x2), region = 87 }

</bundles_post_ra>
